<compile_context>
chip_gen: v6e
topology: v6e:2x2x1
jax: 0.10.0
libtpu: 0.0.40
codegen_flags: <defaults>
</compile_context>

<pallas_src>
import jax
import jax.numpy as jnp
from jax import lax
from jax.experimental import pallas as pl
from jax.experimental.pallas import tpu as pltpu


def _logsigmoid(x):
    # numerically stable log-sigmoid (matches torch.nn.LogSigmoid)
    return jnp.minimum(x, 0.0) - jnp.log1p(jnp.exp(-jnp.abs(x)))


def cbow_loss_kernel(c_ref, t_ref, n_ref, vw_ref, uw_ref, out_ref):
    """One B-tile: fused gather (one-hot matmul) + scores + logsigmoid partial sum."""
    vw = vw_ref[...]                      # (Vocab, P) f32, whole table in VMEM
    uw = uw_ref[...]                      # (Vocab, P) f32
    c = c_ref[...]                        # (tb, 1) int32 center indices
    t = t_ref[...]                        # (tb, 1) int32 target indices
    n = n_ref[...]                        # (tb, K) int32 negative indices

    tb = c.shape[0]
    vocab = vw.shape[0]
    K = n.shape[1]

    # Fused gather via one-hot / multi-hot matmuls (MXU).
    vocab_ids = lax.broadcasted_iota(jnp.int32, (tb, vocab), 1)       # (tb, Vocab)
    c_onehot = (vocab_ids == c).astype(jnp.float32)                   # (tb, Vocab)
    t_onehot = (vocab_ids == t).astype(jnp.float32)                   # (tb, Vocab)

    # Multi-hot counts over the K negatives: counts @ U == sum_k U[neg[:,k]]
    # (K-sum-first rewrite happens "for free" here).  K is static & small.
    n_counts = jnp.zeros((tb, vocab), jnp.float32)
    for k in range(K):
        n_counts = n_counts + (vocab_ids == n[:, k:k + 1]).astype(jnp.float32)

    v = jnp.dot(c_onehot, vw, preferred_element_type=jnp.float32)     # (tb, P)
    u = jnp.dot(t_onehot, uw, preferred_element_type=jnp.float32)     # (tb, P)
    un_sum = jnp.dot(n_counts, uw, preferred_element_type=jnp.float32)  # (tb, P)

    pos = jnp.sum(u * v, axis=-1, keepdims=True)                      # (tb, 1)
    neg = -jnp.sum(un_sum * v, axis=-1, keepdims=True)                # (tb, 1)

    loss_terms = _logsigmoid(pos) + _logsigmoid(neg)                  # (tb, 1)
    partial = jnp.sum(loss_terms, axis=0, keepdims=True)              # (1, 1)

    # Lane-dense partial-sum row (unmasked full-width store); reduced in JAX.
    out_ref[...] = jnp.broadcast_to(partial, out_ref.shape)           # (1, 128)


def cbow_forward(V_w, U_w, center_words, target_words, neg_words, *, tile_b=None):
    """Forward pass: fused gather + loss inside one Pallas kernel."""
    B = center_words.shape[0]
    vocab, P = V_w.shape
    K = neg_words.shape[1]

    if tile_b is None:
        tile_b = B                       # toy sizes: one tile covers the batch
    assert B % tile_b == 0
    num_tiles = B // tile_b

    c = center_words.reshape(B, 1).astype(jnp.int32)
    t = target_words.reshape(B, 1).astype(jnp.int32)
    n = neg_words.astype(jnp.int32)

    partials = pl.pallas_call(
        cbow_loss_kernel,
        out_shape=jax.ShapeDtypeStruct((num_tiles, 128), jnp.float32),
        grid_spec=pltpu.PrefetchScalarGridSpec(
            num_scalar_prefetch=0,
            grid=(num_tiles,),
            in_specs=[
                pl.BlockSpec((tile_b, 1), lambda i: (i, 0)),     # center idx tile
                pl.BlockSpec((tile_b, 1), lambda i: (i, 0)),     # target idx tile
                pl.BlockSpec((tile_b, K), lambda i: (i, 0)),     # neg idx tile
                pl.BlockSpec((vocab, P), lambda i: (0, 0)),      # V table (resident)
                pl.BlockSpec((vocab, P), lambda i: (0, 0)),      # U table (resident)
            ],
            out_specs=pl.BlockSpec((1, 128), lambda i: (i, 0)),  # per-tile partial
        ),
        compiler_params=pltpu.CompilerParams(
            dimension_semantics=("parallel",)),
    )(c, t, n, V_w, U_w)

    # Finish the mean in JAX: loss = -mean(logsigmoid(pos) + logsigmoid(neg)).
    return -(jnp.sum(partials[:, 0]) / B)


def reference_forward(V_w, U_w, center_words, target_words, neg_words):
    """Pure-JAX reference mirroring the PyTorch forward."""
    v = V_w[center_words]                  # (B, 1, P)
    u = U_w[target_words]                  # (B, 1, P)
    u_neg = -U_w[neg_words]                # (B, K, P)
    pos_score = jnp.squeeze(jnp.einsum('bip,bjp->bij', u, v), axis=2)           # (B, 1)
    neg_score = jnp.sum(
        jnp.squeeze(jnp.einsum('bkp,bjp->bkj', u_neg, v), axis=2),
        axis=1, keepdims=True)                                                  # (B, 1)
    loss = _logsigmoid(pos_score) + _logsigmoid(neg_score)
    return -jnp.mean(loss)


if __name__ == "__main__":
    input_size = 50        # vocab size
    projection_size = 32   # embedding dim
    B = 8                  # batch
    K = 4                  # number of negative samples

    key = jax.random.PRNGKey(0)
    k_v, k_u, k_c, k_t, k_n = jax.random.split(key, 5)

    initrange = (2.0 / (input_size + projection_size)) ** 5
    V_w = jax.random.uniform(
        k_v, (input_size, projection_size), jnp.float32,
        minval=-initrange, maxval=initrange)
    # NOTE: the module inits U to zeros (uniform(-0.0, 0.0)); we use small random
    # values here so the kernel computation is actually exercised.
    U_w = jax.random.uniform(
        k_u, (input_size, projection_size), jnp.float32,
        minval=-initrange, maxval=initrange)

    center_words = jax.random.randint(k_c, (B, 1), 0, input_size, jnp.int32)
    target_words = jax.random.randint(k_t, (B, 1), 0, input_size, jnp.int32)
    neg_words = jax.random.randint(k_n, (B, K), 0, input_size, jnp.int32)

    out = cbow_forward(V_w, U_w, center_words, target_words, neg_words)
    out = jax.block_until_ready(out)

    ref = reference_forward(V_w, U_w, center_words, target_words, neg_words)
    assert jnp.allclose(out, ref, atol=1e-5, rtol=1e-5), (out, ref)

    print("KERNEL_OK")
</pallas_src>

<mosaic_0001>
module attributes {stable_mosaic.version = 11 : i64} {
  func.func @cbow_loss_kernel(%arg0: i32, %arg1: memref<8x1xi32, #tpu.memory_space<vmem>>, %arg2: memref<8x1xi32, #tpu.memory_space<vmem>>, %arg3: memref<8x4xi32, #tpu.memory_space<vmem>>, %arg4: memref<50x32xf32, #tpu.memory_space<vmem>>, %arg5: memref<50x32xf32, #tpu.memory_space<vmem>>, %arg6: memref<1x128xf32, #tpu.memory_space<vmem>>) attributes {dimension_semantics = [#tpu.dimension_semantics<parallel>], iteration_bounds = array<i64: 1>, scalar_prefetch = 0 : i64, scratch_operands = 0 : i64, tpu.core_type = #tpu.core_type<tc>, window_params = [{transform_indices = @transform_0, window_bounds = array<i64: 8, 1>}, {transform_indices = @transform_1, window_bounds = array<i64: 8, 1>}, {transform_indices = @transform_2, window_bounds = array<i64: 8, 4>}, {pipeline_mode = #tpu.pipeline_mode<synchronous>, transform_indices = @transform_3, window_bounds = array<i64: 50, 32>}, {pipeline_mode = #tpu.pipeline_mode<synchronous>, transform_indices = @transform_4, window_bounds = array<i64: 50, 32>}, {transform_indices = @transform_5, window_bounds = array<i64: 1, 128>}]} {
    %c0 = arith.constant 0 : index
    %c0_0 = arith.constant 0 : index
    %0 = vector.load %arg4[%c0, %c0_0] : memref<50x32xf32, #tpu.memory_space<vmem>>, vector<50x32xf32>
    %c0_1 = arith.constant 0 : index
    %c0_2 = arith.constant 0 : index
    %1 = vector.load %arg5[%c0_1, %c0_2] : memref<50x32xf32, #tpu.memory_space<vmem>>, vector<50x32xf32>
    %c0_3 = arith.constant 0 : index
    %c0_4 = arith.constant 0 : index
    %2 = vector.load %arg1[%c0_3, %c0_4] : memref<8x1xi32, #tpu.memory_space<vmem>>, vector<8x1xi32>
    %c0_5 = arith.constant 0 : index
    %c0_6 = arith.constant 0 : index
    %3 = vector.load %arg2[%c0_5, %c0_6] : memref<8x1xi32, #tpu.memory_space<vmem>>, vector<8x1xi32>
    %c0_7 = arith.constant 0 : index
    %c0_8 = arith.constant 0 : index
    %4 = vector.load %arg3[%c0_7, %c0_8] : memref<8x4xi32, #tpu.memory_space<vmem>>, vector<8x4xi32>
    %5 = tpu.iota {dimensions = array<i32: 1>} : vector<8x50xi32>
    %6 = vector.broadcast %2 : vector<8x1xi32> to vector<8x50xi32>
    %7 = arith.cmpi eq, %5, %6 : vector<8x50xi32>
    %8 = arith.extui %7 : vector<8x50xi1> to vector<8x50xi32>
    %9 = arith.sitofp %8 : vector<8x50xi32> to vector<8x50xf32>
    %10 = vector.broadcast %3 : vector<8x1xi32> to vector<8x50xi32>
    %11 = arith.cmpi eq, %5, %10 : vector<8x50xi32>
    %12 = arith.extui %11 : vector<8x50xi1> to vector<8x50xi32>
    %13 = arith.sitofp %12 : vector<8x50xi32> to vector<8x50xf32>
    %cst = arith.constant 0.000000e+00 : f32
    %14 = vector.broadcast %cst : f32 to vector<8x50xf32>
    %15 = vector.extract_strided_slice %4 {offsets = [0, 0], sizes = [8, 1], strides = [1, 1]} : vector<8x4xi32> to vector<8x1xi32>
    %16 = vector.broadcast %15 : vector<8x1xi32> to vector<8x50xi32>
    %17 = arith.cmpi eq, %5, %16 : vector<8x50xi32>
    %18 = arith.extui %17 : vector<8x50xi1> to vector<8x50xi32>
    %19 = arith.sitofp %18 : vector<8x50xi32> to vector<8x50xf32>
    %20 = arith.addf %14, %19 : vector<8x50xf32>
    %21 = vector.extract_strided_slice %4 {offsets = [0, 1], sizes = [8, 1], strides = [1, 1]} : vector<8x4xi32> to vector<8x1xi32>
    %22 = vector.broadcast %21 : vector<8x1xi32> to vector<8x50xi32>
    %23 = arith.cmpi eq, %5, %22 : vector<8x50xi32>
    %24 = arith.extui %23 : vector<8x50xi1> to vector<8x50xi32>
    %25 = arith.sitofp %24 : vector<8x50xi32> to vector<8x50xf32>
    %26 = arith.addf %20, %25 : vector<8x50xf32>
    %27 = vector.extract_strided_slice %4 {offsets = [0, 2], sizes = [8, 1], strides = [1, 1]} : vector<8x4xi32> to vector<8x1xi32>
    %28 = vector.broadcast %27 : vector<8x1xi32> to vector<8x50xi32>
    %29 = arith.cmpi eq, %5, %28 : vector<8x50xi32>
    %30 = arith.extui %29 : vector<8x50xi1> to vector<8x50xi32>
    %31 = arith.sitofp %30 : vector<8x50xi32> to vector<8x50xf32>
    %32 = arith.addf %26, %31 : vector<8x50xf32>
    %33 = vector.extract_strided_slice %4 {offsets = [0, 3], sizes = [8, 1], strides = [1, 1]} : vector<8x4xi32> to vector<8x1xi32>
    %34 = vector.broadcast %33 : vector<8x1xi32> to vector<8x50xi32>
    %35 = arith.cmpi eq, %5, %34 : vector<8x50xi32>
    %36 = arith.extui %35 : vector<8x50xi1> to vector<8x50xi32>
    %37 = arith.sitofp %36 : vector<8x50xi32> to vector<8x50xf32>
    %38 = arith.addf %32, %37 : vector<8x50xf32>
    %cst_9 = arith.constant dense<0.000000e+00> : vector<8x32xf32>
    %39 = tpu.matmul %9, %0, %cst_9 {dimension_numbers = #tpu.dot_dimension_numbers<[1], [0], [0], [1], [0, 0, 1, 1], [], []>} : vector<8x50xf32>, vector<50x32xf32>, vector<8x32xf32> -> vector<8x32xf32>
    %cst_10 = arith.constant dense<0.000000e+00> : vector<8x32xf32>
    %40 = tpu.matmul %13, %1, %cst_10 {dimension_numbers = #tpu.dot_dimension_numbers<[1], [0], [0], [1], [0, 0, 1, 1], [], []>} : vector<8x50xf32>, vector<50x32xf32>, vector<8x32xf32> -> vector<8x32xf32>
    %cst_11 = arith.constant dense<0.000000e+00> : vector<8x32xf32>
    %41 = tpu.matmul %38, %1, %cst_11 {dimension_numbers = #tpu.dot_dimension_numbers<[1], [0], [0], [1], [0, 0, 1, 1], [], []>} : vector<8x50xf32>, vector<50x32xf32>, vector<8x32xf32> -> vector<8x32xf32>
    %42 = arith.mulf %40, %39 : vector<8x32xf32>
    %cst_12 = arith.constant dense<0.000000e+00> : vector<8xf32>
    %43 = vector.multi_reduction <add>, %42, %cst_12 [1] : vector<8x32xf32> to vector<8xf32>
    %44 = vector.shape_cast %43 : vector<8xf32> to vector<8x1xf32>
    %45 = arith.mulf %41, %39 : vector<8x32xf32>
    %cst_13 = arith.constant dense<0.000000e+00> : vector<8xf32>
    %46 = vector.multi_reduction <add>, %45, %cst_13 [1] : vector<8x32xf32> to vector<8xf32>
    %47 = vector.shape_cast %46 : vector<8xf32> to vector<8x1xf32>
    %cst_14 = arith.constant 0.000000e+00 : f32
    %48 = vector.broadcast %cst_14 : f32 to vector<8x1xf32>
    %49 = arith.subf %48, %47 : vector<8x1xf32>
    %cst_15 = arith.constant 0.000000e+00 : f32
    %50 = vector.broadcast %cst_15 : f32 to vector<8x1xf32>
    %51 = arith.minimumf %44, %50 : vector<8x1xf32>
    %52 = math.absf %44 : vector<8x1xf32>
    %cst_16 = arith.constant 0.000000e+00 : f32
    %53 = vector.broadcast %cst_16 : f32 to vector<8x1xf32>
    %54 = arith.subf %53, %52 : vector<8x1xf32>
    %55 = math.exp %54 : vector<8x1xf32>
    %56 = math.log1p %55 : vector<8x1xf32>
    %57 = arith.subf %51, %56 : vector<8x1xf32>
    %cst_17 = arith.constant 0.000000e+00 : f32
    %58 = vector.broadcast %cst_17 : f32 to vector<8x1xf32>
    %59 = arith.minimumf %49, %58 : vector<8x1xf32>
    %60 = math.absf %49 : vector<8x1xf32>
    %cst_18 = arith.constant 0.000000e+00 : f32
    %61 = vector.broadcast %cst_18 : f32 to vector<8x1xf32>
    %62 = arith.subf %61, %60 : vector<8x1xf32>
    %63 = math.exp %62 : vector<8x1xf32>
    %64 = math.log1p %63 : vector<8x1xf32>
    %65 = arith.subf %59, %64 : vector<8x1xf32>
    %66 = arith.addf %57, %65 : vector<8x1xf32>
    %cst_19 = arith.constant dense<0.000000e+00> : vector<1xf32>
    %67 = vector.multi_reduction <add>, %66, %cst_19 [0] : vector<8x1xf32> to vector<1xf32>
    %68 = vector.shape_cast %67 : vector<1xf32> to vector<1x1xf32>
    %69 = vector.shape_cast %68 : vector<1x1xf32> to vector<1x1xf32>
    %70 = vector.broadcast %69 : vector<1x1xf32> to vector<1x128xf32>
    %c0_20 = arith.constant 0 : index
    %c0_21 = arith.constant 0 : index
    %71 = vector.load %arg6[%c0_20, %c0_21] : memref<1x128xf32, #tpu.memory_space<vmem>>, vector<1x128xf32>
    tpu.vector_store %arg6[%c0_20, %c0_21], %70 {strides = array<i32>} : memref<1x128xf32, #tpu.memory_space<vmem>>, vector<1x128xf32>,
    return
  }
  func.func @transform_0(%arg0: i32) -> (i32, i32) {
    %c0_i32 = arith.constant 0 : i32
    %c0_i32_0 = arith.constant 0 : i32
    return %arg0, %c0_i32 : i32, i32
  }
  func.func @transform_1(%arg0: i32) -> (i32, i32) {
    %c0_i32 = arith.constant 0 : i32
    %c0_i32_0 = arith.constant 0 : i32
    return %arg0, %c0_i32 : i32, i32
  }
  func.func @transform_2(%arg0: i32) -> (i32, i32) {
    %c0_i32 = arith.constant 0 : i32
    %c0_i32_0 = arith.constant 0 : i32
    return %arg0, %c0_i32 : i32, i32
  }
  func.func @transform_3(%arg0: i32) -> (i32, i32) {
    %c0_i32 = arith.constant 0 : i32
    %c0_i32_0 = arith.constant 0 : i32
    %c0_i32_1 = arith.constant 0 : i32
    return %c0_i32, %c0_i32_0 : i32, i32
  }
  func.func @transform_4(%arg0: i32) -> (i32, i32) {
    %c0_i32 = arith.constant 0 : i32
    %c0_i32_0 = arith.constant 0 : i32
    %c0_i32_1 = arith.constant 0 : i32
    return %c0_i32, %c0_i32_0 : i32, i32
  }
  func.func @transform_5(%arg0: i32) -> (i32, i32) {
    %c0_i32 = arith.constant 0 : i32
    %c0_i32_0 = arith.constant 0 : i32
    return %arg0, %c0_i32 : i32, i32
  }
}

</mosaic_0001>

<bundles_post_ra>
// kernel: tpu_custom_call.1
= control target key start
LH: loop header
LB: loop body
LE: loop exit
PB: predicated region body
PF: predicated region fallthrough
CT: control target
= control target key end

     0   :  { %v498_v2 = vmov 1   ;;  %v499_v3 = vmov 0   ;;  %vm84_vm0 = vcmask 1041408   ;;  %v500_v5 = vmov 0.0   ;;  %s632_s0 = inlined_call_operand.vmem [shape: s32[8,1], index: 0, kind: input, shape index: {}]   ;;  %s633_s1 = inlined_call_operand.vmem [shape: s32[8,1], index: 1, kind: input, shape index: {}]   ;;  %s634_s2 = inlined_call_operand.vmem [shape: s32[8,4], index: 2, kind: input, shape index: {}]   ;;  %s635_s3 = inlined_call_operand.vmem [shape: f32[50,32], index: 3, kind: input, shape index: {}]   ;;  %s636_s4 = inlined_call_operand.vmem [shape: f32[50,32], index: 4, kind: input, shape index: {}]   ;;  %s637_s5 = inlined_call_operand.hbm [shape: f32[1,128], index: 5, kind: output, shape index: {}]  }
   0x1   :  { %v37_v0 = vld [vmem:[%s634_s2] sm:$0xff]  ;;  %464 = vset.pattern.permute.xlu1 %v498_v2  ;;  %463 = vset.pattern.permute.xlu0 %v499_v3  ;;  %v27_v4 = vld [vmem:[%s635_s3 + $0x30] sm:$0x3]  ;;  %v26_v7 = vld [vmem:[%s635_s3 + $0x28] sm:$0xff] }
   0x2   :  { %v35_v1 = vld [vmem:[%s632_s0] sm:$0xff]  ;;  %60 = vperm.xlu1 %464, %v37_v0   ;;  %405 = vmatprep.subr.mxu0 %v500_v5  ;;  %v549_v6 = vld [vmem:[%s636_s4 + $0x30] sm:$0x3] }
   0x3   :  { %41 = vperm.xlu0 %463, %v35_v1   ;;  %422 = vmatprep.subr.mxu1 %v500_v5 }
   0x4   :  { %406 = vmatpush3.msk.msra.mxu0 %vm84_vm0, %v27_v4  ;;  %423 = vmatpush3.msk.msra.mxu1 %vm84_vm0, %v549_v6 }
   0x5   :  { %407 = vmatprep.subr.mxu0 %v500_v5  ;;  %424 = vmatprep.subr.mxu1 %v500_v5 }
   0x6   :  { %10 = vsyncpa [#allocation3], 0  ;;  %v501_v8 = vmov 2   ;;  %v25_v9 = vld [vmem:[%s635_s3 + $0x20] sm:$0xff]  ;;  %v33_v10 = vld [vmem:[%s636_s4 + $0x28] sm:$0xff]  ;;  %408 = vmatpush3.msra.mxu0 %v26_v7  ;;  %vm502_vm1 = vmmov 0   ;;  %v38_v22 = vlaneseq }
   0x7   :  { %465 = vset.pattern.permute.xlu1 %v501_v8  ;;  %53 = vperm.xlu0 %463, %v37_v0   ;;  %v36_v11 = vld [vmem:[%s633_s1] sm:$0xff]  ;;  %v24_v12 = vld [vmem:[%s635_s3 + $0x18] sm:$0xff]  ;;  %v503_v13 = vmov 3   ;;  %v23_v14 = vld [vmem:[%s635_s3 + $0x10] sm:$0xff]  ;;  %vm80_vm2 = vcmask 408576   ;;  %vm308_vm9 = vcmask 261120  }
   0x8   :  { %67 = vperm.xlu1 %465, %v37_v0   ;;  %409 = vmatprep.subr.mxu0 %v500_v5  ;;  %v32_v15 = vld [vmem:[%s636_s4 + $0x20] sm:$0xff]  ;;  %v22_v16 = vld [vmem:[%s635_s3 + $0x8] sm:$0xff]  ;;  %v31_v17 = vld [vmem:[%s636_s4 + $0x18] sm:$0xff]  ;;  %v39_v23 = vand.u32 127, %v38_v22 }
   0x9   :  { %419 = vmatprep.mubr.msk.f32.mxu0 %vm502_vm1, %v500_v5  ;;  %410 = vmatpush3.msra.mxu0 %v25_v9  ;;  %v21_v18 = vld [vmem:[%s635_s3] sm:$0xff]  ;;  %v30_v19 = vld [vmem:[%s636_s4 + $0x10] sm:$0xff]  ;;  %v29_v20 = vld [vmem:[%s636_s4 + $0x8] sm:$0xff] }
   0xa   :  { %425 = vmatpush3.msra.mxu1 %v33_v10  ;;  %411 = vmatprep.subr.mxu0 %v500_v5  ;;  %v28_v21 = vld [vmem:[%s636_s4] sm:$0xff]  ;;  %s504_s4 = smov [#allocation2]  }
   0xb   :  { %466 = vset.pattern.permute.xlu0 %v503_v13  ;;  %412 = vmatpush3.msra.mxu0 %v24_v12  ;;  %s361_s23 = sshll.u32 %s504_s4, 4  ;;  %s362_s23 = int_to_ptr.vmem [resolvable:$true] %s361_s23 }
   0xc   :  { %467 = vset.pattern.permute.xlu1 %v499_v3  ;;  %74 = vperm.xlu0 %466, %v37_v0   ;;  %s476_s2 = scalar_lea.vmem %s362_s23, 16  ;;  %s480_s24 = scalar_lea.vmem %s362_s23, 32 }
   0xd   :  { %47 = vperm.xlu1 %467, %v36_v11   ;;  %413 = vmatprep.subr.mxu0 %v500_v5  ;;  %p477_p0 = scmp.ne.s32.totalorder %s362_s23, %s476_s2  ;;  %p481_p1 = scmp.lt.s32.totalorder %s362_s23, %s362_s23 }
   0xe   :  { %426 = vmatprep.subr.mxu1 %v500_v5  ;;  %414 = vmatpush3.msra.mxu0 %v23_v14  ;;  %p482_p2 = scmp.lt.s32.totalorder %s480_s24, %s476_s2 }
   0xf   :  { %427 = vmatpush3.msra.mxu1 %v32_v15  ;;  %415 = vmatprep.subr.mxu0 %v500_v5 }
  0x10   :  { %428 = vmatprep.subr.mxu1 %v500_v5  ;;  %416 = vmatpush3.msra.mxu0 %v22_v16  ;;  %p483_p3 = por %p482_p2, %p481_p1 }
  0x11   :  { %429 = vmatpush3.msra.mxu1 %v31_v17  ;;  %417 = vmatprep.subr.mxu0 %v500_v5 }
  0x12   :  { %430 = vmatprep.subr.mxu1 %v500_v5  ;;  %418 = vmatpush3.msra.mxu0 %v21_v18  ;;  %p484_p4 = pnand %p483_p3, %p477_p0 }
  0x13   :  { %431 = vmatpush3.msra.mxu1 %v30_v19  ;;  %439 = vmatprep.subr.mxu0 %v500_v5 }
  0x14   :  { %432 = vmatprep.subr.mxu1 %v500_v5  ;;  %436 = vmatprep.mubr.msk.f32.mxu1 %vm502_vm1, %v500_v5 }
  0x15   :  { %433 = vmatpush3.msra.mxu1 %v29_v20 }
  0x16   :  { %434 = vmatprep.subr.mxu1 %v500_v5 }
  0x17   :  { %435 = vmatpush3.msra.mxu1 %v28_v21 }
  0x7d   :  { %v61_v25 = vpop.permute.xlu1 %60 }
  0x7e   :  { %v42_v24 = vpop.permute.xlu0 %41  ;;  %vm62_vm4 = vcmp.eq.s32.totalorder %v39_v23, %v61_v25 }
  0x7f   :  { %vm43_vm3 = vcmp.eq.s32.totalorder %v39_v23, %v42_v24  ;;  %v372_v27 = vsel %vm62_vm4, 1.0, %v500_v5 }
  0x80   :  { %v369_v26 = vsel %vm43_vm3, 1.0, %v500_v5 }
  0x81   :  { %420 = vmatmul.mubr.msk.f32.vlgmr.msra.gmra.mxu0 %vm80_vm2, %v369_v26 }
  0x82   :  { %440 = vmatpush3.msk.msra.mxu0 %vm84_vm0, %v549_v6  ;;  %v54_v28 = vpop.permute.xlu0 %53  ;;  %453 = vmatprep.mubr.msk.f32.mxu0 %vm502_vm1, %v500_v5 }
  0x83   :  { %vm55_vm5 = vcmp.eq.s32.totalorder %v39_v23, %v54_v28  ;;  %441 = vmatprep.subr.mxu0 %v500_v5  ;;  %v68_v29 = vpop.permute.xlu1 %67 }
  0x84   :  { %v371_v30 = vsel %vm55_vm5, 1.0, %v500_v5  ;;  %442 = vmatpush3.msra.mxu0 %v33_v10  ;;  %vm69_vm6 = vcmp.eq.s32.totalorder %v39_v23, %v68_v29 }
  0x85   :  { %v65_v31 = vadd.f32 %v372_v27, %v371_v30  ;;  %443 = vmatprep.subr.mxu0 %v500_v5  ;;  %v373_v32 = vsel %vm69_vm6, 1.0, %v500_v5 }
  0x86   :  { %444 = vmatpush3.msra.mxu0 %v32_v15 }
  0x87   :  { %445 = vmatprep.subr.mxu0 %v500_v5  ;;  %v75_v33 = vpop.permute.xlu0 %74  ;;  %v72_v35 = vadd.f32 %v373_v32, %v65_v31 }
  0x88   :  { %vm76_vm7 = vcmp.eq.s32.totalorder %v39_v23, %v75_v33  ;;  %446 = vmatpush3.msra.mxu0 %v31_v17  ;;  %v48_v34 = vpop.permute.xlu1 %47 }
  0x89   :  { %vm49_vm8 = vcmp.eq.s32.totalorder %v39_v23, %v48_v34  ;;  %447 = vmatprep.subr.mxu0 %v500_v5  ;;  %v374_v36 = vsel %vm76_vm7, 1.0, %v500_v5 }
  0x8a   :  { %v370_v37 = vsel %vm49_vm8, 1.0, %v500_v5  ;;  %448 = vmatpush3.msra.mxu0 %v30_v19  ;;  %v79_v38 = vadd.f32 %v374_v36, %v72_v35 }
  0x8b   :  { %449 = vmatprep.subr.mxu0 %v500_v5  ;;  %437 = vmatmul.mubr.msk.f32.vlgmr.msra.gmra.mxu1 %vm80_vm2, %v370_v37 }
  0x8c   :  { %450 = vmatpush3.msra.mxu0 %v29_v20 }
  0x8d   :  { %451 = vmatprep.subr.mxu0 %v500_v5 }
  0x8e   :  { %452 = vmatpush3.msra.mxu0 %v28_v21 }
  0x8f   :  { %454 = vmatmul.mubr.msk.f32.vlgmr.msra.gmra.mxu0 %vm80_vm2, %v79_v38 }
 0x141   :  { %v154_v39 = vpop.f32.mrf.mxu0 }
 0x143   :  { %v421_v40 = vpop.f32.mrf.mxu0 }
 0x14b   :  { %v230_v41 = vpop.f32.mrf.mxu1 }
 0x14c   :  { %v307_v42 = vmul.f32 %v230_v41, %v154_v39 }
 0x14d   :  { %v438_v43 = vpop.f32.mrf.mxu1 }
 0x14e   :  { %v309_v44 = vsel %vm308_vm9, %v307_v42, 0.0 }
 0x14f   :  { %v303_v45 = vpop.f32.mrf.mxu0  ;;  %310 = vadd.xlane.f32.xlu0 %v309_v44 }
 0x150   :  { %v312_v46 = vmul.f32 %v303_v45, %v154_v39 }
 0x151   :  { %v455_v47 = vpop.f32.mrf.mxu0 }
 0x152   :  { %v313_v48 = vsel %vm308_vm9, %v312_v46, 0.0 }
 0x153   :  { %314 = vadd.xlane.f32.xlu1 %v313_v48 }
 0x1d8   :  { %v311_v49 = vpop.xlane.xlu0 %310 }
 0x1d9   :  { %v318_v50 = vand.u32 2147483647, %v311_v49  ;;  %v317_v11 = vmin.f32 %v311_v49, 0.0 }
 0x1db   :  { %v319_v51 = vsub.f32 0.0, %v318_v50 }
 0x1dc   :  { %v315_v52 = vpop.xlane.xlu1 %314 }
 0x1dd   :  { %v320_v53 = vmul.f32 1.442695, %v319_v51  ;;  %v316_v54 = vsub.f32 0.0, %v315_v52 }
 0x1df   :  { %468 = vpow2.f32 %v320_v53  ;;  %v333_v55 = vand.u32 2147483647, %v316_v54  ;;  %v332_v12 = vmin.f32 %v316_v54, 0.0 }
 0x1e1   :  { %v334_v56 = vsub.f32 0.0, %v333_v55 }
 0x1e3   :  { %v335_v57 = vmul.f32 1.442695, %v334_v56 }
 0x1e5   :  { %470 = vpow2.f32 %v335_v57 }
 0x1ec   :  { %v469_v58 = vpop.eup %468 }
 0x1ed   :  { %v322_v59 = vadd.f32 1.0, %v469_v58  ;;  %v325_v62 = vmul.f32 -0.5, %v469_v58  ;;  %v328_v2 = vand.u32 2147483647, %v469_v58 }
 0x1ef   :  { %472 = vlog2.f32 %v322_v59  ;;  %v326_v1 = vadd.f32 1.0, %v325_v62  ;;  %vm329_vm10 = vcmp.lt.f32.partialorder %v328_v2, 0.0004427343 }
 0x1f1   :  { %v327_v6 = vmul.f32 %v469_v58, %v326_v1 }
 0x1f2   :  { %v471_v60 = vpop.eup %470 }
 0x1f3   :  { %v337_v61 = vadd.f32 1.0, %v471_v60  ;;  %v340_v63 = vmul.f32 -0.5, %v471_v60  ;;  %v343_v5 = vand.u32 2147483647, %v471_v60 }
 0x1f5   :  { %474 = vlog2.f32 %v337_v61  ;;  %v341_v4 = vadd.f32 1.0, %v340_v63  ;;  %vm344_vm11 = vcmp.lt.f32.partialorder %v343_v5, 0.0004427343 }
 0x1f7   :  { %v342_v10 = vmul.f32 %v471_v60, %v341_v4 }
 0x1fc   :  { %v473_v0 = vpop.eup %472 }
 0x1fd   :  { %v324_v3 = vmul.f32 0.6931472, %v473_v0 }
 0x1ff   :  { %v330_v8 = vsel %vm329_vm10, %v327_v6, %v324_v3 }
 0x200   :  { %v331_v14 = vsub.f32 %v317_v11, %v330_v8 }
 0x202   :  { %v475_v7 = vpop.eup %474 }
 0x203   :  { %v339_v9 = vmul.f32 0.6931472, %v475_v7 }
 0x205   :  { %v345_v13 = vsel %vm344_vm11, %v342_v10, %v339_v9 }
 0x206   :  { %v346_v15 = vsub.f32 %v332_v12, %v345_v13 }
 0x208   :  { %v347_v16 = vadd.f32 %v346_v15, %v331_v14 }
 0x20a   :  { %v348_v17 = vrot.slane %v347_v16, 4 }
 0x20c   :  { %v349_v18 = vadd.f32 %v348_v17, %v347_v16 }
 0x20e   :  { %v350_v19 = vrot.slane %v349_v18, 2 }
 0x210   :  { %v351_v20 = vadd.f32 %v350_v19, %v349_v18 }
 0x212   :  { %v352_v21 = vrot.slane %v351_v20, 1 }
 0x214   :  { %v353_v22 = vadd.f32 %v352_v21, %v351_v20 }
 0x216   :  { %354 = vst [vmem:[#allocation2] sm:$0x1] %v353_v22 }
 0x217   :  { %487 = shalt.err (!%p484_p4)
}
 0x218   :  { %364 = dma.vmem_to_hbm [thread:$0]  %s362_s23, 16, %s637_s5, [#allocation3]  }
 0x219   :  { %496 = dma.done.wait [#allocation3], 16  }
 0x21a   :  { %497 = vsyncadd [#allocation3], 4294967280 }
 0x21b   :  { %368 = vsyncpa [#allocation3], 1 }

</bundles_post_ra>
